<compile_context>
chip_gen: v7x
topology: tpu7x:2x2x1
jax: 0.10.0
libtpu: 0.0.40
codegen_flags: <defaults>
</compile_context>

<pallas_src>
import math

import jax
import jax.numpy as jnp
from jax import lax
from jax.experimental import pallas as pl
from jax.experimental.pallas import tpu as pltpu

# Large finite negative: same softmax result as -inf for causal masks (the
# diagonal is always unmasked) but NaN-free along every code path.
_MASK_VALUE = -1e30


def _make_kernel(H, d_out, T, tq, n_q, scale, mm_dtype):
    hd = H * d_out

    def kernel(x_ref, w_ref, o_ref, kv_ref):
        # x_ref : (1, T, d_in)   resident across the q-tile axis (1 DMA per b)
        # w_ref : (d_in, 3*hd)   fused [Q | K | V] weights, grid-invariant
        # o_ref : (1, tq, hd)    lane-dense output tile
        # kv_ref: (T, 2*hd)      per-batch K/V scratch, matmul dtype
        qi = pl.program_id(1)

        # ---- K/V projection: once per batch element (q-tile axis innermost).
        @pl.when(qi == 0)
        def _project_kv():
            x_full = x_ref[0].astype(mm_dtype)                       # (T, d_in)
            kv = jnp.dot(x_full, w_ref[:, hd:],
                         preferred_element_type=jnp.float32)         # (T, 2*hd)
            kv_ref[...] = kv.astype(kv_ref.dtype)

        # ---- Q projection for this tile only: slice x rows BEFORE the matmul.
        if n_q == 1:
            q_start = 0
            x_tile = x_ref[0]
        else:
            q_start = pl.multiple_of(qi * tq, tq)
            x_tile = x_ref[0, pl.ds(q_start, tq), :]                 # (tq, d_in)
        q_all = jnp.dot(x_tile.astype(mm_dtype), w_ref[:, :hd],
                        preferred_element_type=jnp.float32)          # (tq, hd)
        q_all = (q_all * scale).astype(mm_dtype)   # fold 1/sqrt(d_out) into q
        q_heads = [q_all[:, h * d_out:(h + 1) * d_out] for h in range(H)]

        dims = (((1,), (1,)), ((), ()))            # q @ k^T without transpose

        if n_q == 1:
            # Single tile covers the whole sequence: plain masked softmax.
            rows = lax.broadcasted_iota(jnp.int32, (tq, T), 0)
            cols = lax.broadcasted_iota(jnp.int32, (tq, T), 1)
            above = cols > rows
            kv = kv_ref[...]                                          # (T, 2*hd)
            for h in range(H):                     # static unroll, H is small
                k_h = kv[:, h * d_out:(h + 1) * d_out]
                v_h = kv[:, hd + h * d_out:hd + (h + 1) * d_out]
                s = lax.dot_general(q_heads[h], k_h, dims,
                                    preferred_element_type=jnp.float32)
                s = jnp.where(above, _MASK_VALUE, s)
                m = jnp.max(s, axis=-1, keepdims=True)
                e = jnp.exp(s - m)
                l = jnp.sum(e, axis=-1, keepdims=True)
                ctx = jnp.dot(e.astype(mm_dtype), v_h,
                              preferred_element_type=jnp.float32) / l
                o_ref[0, :, h * d_out:(h + 1) * d_out] = ctx.astype(o_ref.dtype)
        else:
            # Flash-style online softmax over the causal kv prefix: only
            # chunks 0 .. qi are ever read or computed on.
            row_ids = q_start + lax.broadcasted_iota(jnp.int32, (tq, tq), 0)
            col_iota = lax.broadcasted_iota(jnp.int32, (tq, tq), 1)

            def body(j, carry):
                ms, ls, accs = carry
                kv_start = pl.multiple_of(j * tq, tq)
                kv_chunk = kv_ref[pl.ds(kv_start, tq), :]             # (tq, 2*hd)
                above = (kv_start + col_iota) > row_ids
                new_ms, new_ls, new_accs = [], [], []
                for h in range(H):
                    k_h = kv_chunk[:, h * d_out:(h + 1) * d_out]
                    v_h = kv_chunk[:, hd + h * d_out:hd + (h + 1) * d_out]
                    s = lax.dot_general(q_heads[h], k_h, dims,
                                        preferred_element_type=jnp.float32)
                    s = jnp.where(above, _MASK_VALUE, s)
                    m_new = jnp.maximum(ms[h],
                                        jnp.max(s, axis=-1, keepdims=True))
                    alpha = jnp.exp(ms[h] - m_new)
                    p = jnp.exp(s - m_new)
                    new_ls.append(alpha * ls[h]
                                  + jnp.sum(p, axis=-1, keepdims=True))
                    new_accs.append(alpha * accs[h]
                                    + jnp.dot(p.astype(mm_dtype), v_h,
                                              preferred_element_type=jnp.float32))
                    new_ms.append(m_new)
                return tuple(new_ms), tuple(new_ls), tuple(new_accs)

            init = (
                tuple(jnp.full((tq, 1), _MASK_VALUE, jnp.float32)
                      for _ in range(H)),
                tuple(jnp.zeros((tq, 1), jnp.float32) for _ in range(H)),
                tuple(jnp.zeros((tq, d_out), jnp.float32) for _ in range(H)),
            )
            ms, ls, accs = lax.fori_loop(0, qi + 1, body, init)
            for h in range(H):
                ctx = accs[h] / ls[h]                      # exact divide
                o_ref[0, :, h * d_out:(h + 1) * d_out] = ctx.astype(o_ref.dtype)

    return kernel


def multi_head_attention_wrapper(x, wq, wk, wv, *, tq=256,
                                 matmul_dtype=jnp.bfloat16,
                                 single_buffer_weight=False):
    """x: (B, T, d_in); wq/wk/wv: (H, d_in, d_out). Returns (B, T, H*d_out)."""
    B, T, d_in = x.shape
    H, _, d_out = wq.shape
    hd = H * d_out

    # Stack per-head weights into one fused (d_in, 3*H*d_out) matrix with
    # column order [q_h0 .. q_h{H-1} | k_h0 .. | v_h0 ..], in matmul dtype.
    def _stack(w):  # (H, d_in, d_out) -> (d_in, H*d_out)
        return jnp.transpose(w, (1, 0, 2)).reshape(d_in, hd)

    w_qkv = jnp.concatenate([_stack(wq), _stack(wk), _stack(wv)],
                            axis=-1).astype(matmul_dtype)

    # Query-tile size: must divide T and keep sublane alignment, else fall
    # back to the whole sequence in a single tile.
    if tq >= T or T % tq != 0 or tq % 8 != 0:
        tq = T
    n_q = T // tq

    scale = 1.0 / math.sqrt(d_out)
    kernel = _make_kernel(H, d_out, T, tq, n_q, scale, matmul_dtype)

    x_bytes = jnp.dtype(x.dtype).itemsize
    w_bytes = jnp.dtype(matmul_dtype).itemsize
    out_bytes = x_bytes
    kv_width = T if n_q == 1 else tq
    w_bufs = 1 if single_buffer_weight else 2
    # Rough VMEM footprint: pipelined blocks (double-buffered), the K/V
    # scratch and a handful of live (tq, kv_width) f32 score/exp tiles.
    vmem_need = (2 * T * d_in * x_bytes
                 + w_bufs * d_in * 3 * hd * w_bytes
                 + 2 * tq * hd * out_bytes
                 + T * 2 * hd * w_bytes
                 + 6 * tq * kv_width * 4)
    vmem_limit = int(min(100 * 2 ** 20, max(32 * 2 ** 20, 2 * vmem_need)))

    w_spec_kwargs = {}
    if single_buffer_weight:
        # The fused weight is grid-invariant; one VMEM buffer is enough.
        w_spec_kwargs["pipeline_mode"] = pl.Buffered(1)
    w_spec = pl.BlockSpec((d_in, 3 * hd), lambda b, qi: (0, 0), **w_spec_kwargs)

    kv_avg = (T + tq) // 2          # average causal key length per query row
    cost = pl.CostEstimate(
        flops=int(2 * B * T * d_in * 3 * hd + 4 * B * H * T * kv_avg * d_out),
        transcendentals=int(B * H * T * kv_avg),
        bytes_accessed=int(x.size * x_bytes + w_qkv.size * w_bytes
                           + B * T * hd * out_bytes),
    )

    return pl.pallas_call(
        kernel,
        out_shape=jax.ShapeDtypeStruct((B, T, hd), x.dtype),
        grid=(B, n_q),
        in_specs=[
            pl.BlockSpec((1, T, d_in), lambda b, qi: (b, 0, 0)),
            w_spec,
        ],
        out_specs=pl.BlockSpec((1, tq, hd), lambda b, qi: (b, qi, 0)),
        scratch_shapes=[pltpu.VMEM((T, 2 * hd), matmul_dtype)],
        compiler_params=pltpu.CompilerParams(
            # Batch axis carries megacore parallelism (v7x); the q-tile axis
            # must stay sequential so the per-batch K/V scratch carry is valid.
            dimension_semantics=("parallel", "arbitrary"),
            vmem_limit_bytes=vmem_limit,
        ),
        cost_estimate=cost,
    )(x, w_qkv)


def _reference(x, wq, wk, wv):
    """Pure-JAX reference matching the PyTorch MultiHeadAttentionWrapper."""
    B, T, _ = x.shape
    H, _, d_out = wq.shape
    hp = lax.Precision.HIGHEST
    mask = jnp.triu(jnp.ones((T, T), dtype=bool), k=1)
    outs = []
    for h in range(H):
        q = jnp.einsum("btd,de->bte", x, wq[h], precision=hp)
        k = jnp.einsum("btd,de->bte", x, wk[h], precision=hp)
        v = jnp.einsum("btd,de->bte", x, wv[h], precision=hp)
        s = jnp.einsum("btd,bsd->bts", q, k, precision=hp)
        s = jnp.where(mask[None], -jnp.inf, s)
        w = jax.nn.softmax(s / math.sqrt(d_out), axis=-1)
        outs.append(jnp.einsum("bts,bsd->btd", w, v, precision=hp))
    return jnp.concatenate(outs, axis=-1)


if __name__ == "__main__":
    # ---- 1. Chapter shapes: the 6x3 `inputs` tensor stacked into a batch of
    #         2, d_in=3, d_out=2 per head, num_heads=2, dropout=0.0.
    inputs = jnp.array(
        [[0.43, 0.15, 0.89],
         [0.55, 0.87, 0.66],
         [0.57, 0.85, 0.64],
         [0.22, 0.58, 0.33],
         [0.77, 0.25, 0.10],
         [0.05, 0.80, 0.55]], dtype=jnp.float32)
    batch = jnp.stack((inputs, inputs), axis=0)          # (2, 6, 3)
    B, T, d_in = batch.shape
    d_out, num_heads = 2, 2

    key = jax.random.PRNGKey(0)
    kq, kk, kv_, k_rest = jax.random.split(key, 4)
    wq = jax.random.uniform(kq, (num_heads, d_in, d_out), dtype=jnp.float32)
    wk = jax.random.uniform(kk, (num_heads, d_in, d_out), dtype=jnp.float32)
    wv = jax.random.uniform(kv_, (num_heads, d_in, d_out), dtype=jnp.float32)

    ref = _reference(batch, wq, wk, wv)
    assert ref.shape == (B, T, num_heads * d_out)

    out_f32 = jax.block_until_ready(
        multi_head_attention_wrapper(batch, wq, wk, wv,
                                     matmul_dtype=jnp.float32))
    assert out_f32.shape == ref.shape
    assert jnp.allclose(out_f32, ref, atol=2e-3, rtol=2e-3)

    out_bf16 = jax.block_until_ready(
        multi_head_attention_wrapper(batch, wq, wk, wv))   # bf16 matmul default
    assert jnp.allclose(out_bf16, ref, atol=2e-2, rtol=2e-2)

    # ---- 2. Larger shapes exercising the multi-q-tile path (tq=128 -> 3
    #         q-tiles): hoisted K/V scratch + causal flash kv chunks.
    B2, T2, d_in2, d_out2, H2 = 2, 384, 32, 16, 4
    k_x, k_q, k_k, k_v = jax.random.split(k_rest, 4)
    s_w = 1.0 / math.sqrt(d_in2)
    x2 = jax.random.normal(k_x, (B2, T2, d_in2), dtype=jnp.float32)
    wq2 = jax.random.normal(k_q, (H2, d_in2, d_out2), dtype=jnp.float32) * s_w
    wk2 = jax.random.normal(k_k, (H2, d_in2, d_out2), dtype=jnp.float32) * s_w
    wv2 = jax.random.normal(k_v, (H2, d_in2, d_out2), dtype=jnp.float32) * s_w

    ref2 = _reference(x2, wq2, wk2, wv2)
    out2_f32 = jax.block_until_ready(
        multi_head_attention_wrapper(x2, wq2, wk2, wv2, tq=128,
                                     matmul_dtype=jnp.float32))
    assert jnp.allclose(out2_f32, ref2, atol=2e-3, rtol=2e-3)

    out2_bf16 = jax.block_until_ready(
        multi_head_attention_wrapper(x2, wq2, wk2, wv2, tq=128))
    assert jnp.allclose(out2_bf16, ref2, atol=2e-2, rtol=2e-2)

    print("KERNEL_OK")
</pallas_src>

<mosaic_0001>
module attributes {stable_mosaic.version = 11 : i64} {
  func.func @kernel(%arg0: i32, %arg1: i32, %arg2: memref<1x6x3xf32, #tpu.memory_space<vmem>>, %arg3: memref<3x12xf32, #tpu.memory_space<vmem>>, %arg4: memref<1x6x4xf32, #tpu.memory_space<vmem>>, %arg5: memref<6x8xf32, #tpu.memory_space<vmem>>) attributes {dimension_semantics = [#tpu.dimension_semantics<parallel>, #tpu.dimension_semantics<arbitrary>], iteration_bounds = array<i64: 2, 1>, scalar_prefetch = 0 : i64, scratch_operands = 1 : i64, tpu.core_type = #tpu.core_type<tc>, window_params = [{transform_indices = @transform_0, window_bounds = array<i64: 1, 6, 3>}, {pipeline_mode = #tpu.pipeline_mode<synchronous>, transform_indices = @transform_1, window_bounds = array<i64: 3, 12>}, {transform_indices = @transform_2, window_bounds = array<i64: 1, 6, 4>}]} {
    %c0_i32 = arith.constant 0 : i32
    %0 = arith.cmpi eq, %arg1, %c0_i32 : i32
    %1 = arith.extui %0 : i1 to i32
    %c0_i32_0 = arith.constant 0 : i32
    %2 = arith.cmpi ne, %1, %c0_i32_0 : i32
    scf.if %2 {
      %c0_23 = arith.constant 0 : index
      %c0_24 = arith.constant 0 : index
      %c0_25 = arith.constant 0 : index
      %51 = vector.load %arg2[%c0_23, %c0_24, %c0_25] : memref<1x6x3xf32, #tpu.memory_space<vmem>>, vector<1x6x3xf32>
      %52 = vector.shape_cast %51 : vector<1x6x3xf32> to vector<6x3xf32>
      %c0_26 = arith.constant 0 : index
      %c4 = arith.constant 4 : index
      %53 = vector.load %arg3[%c0_26, %c4] : memref<3x12xf32, #tpu.memory_space<vmem>>, vector<3x8xf32>
      %cst_27 = arith.constant dense<0.000000e+00> : vector<6x8xf32>
      %54 = tpu.matmul %52, %53, %cst_27 {dimension_numbers = #tpu.dot_dimension_numbers<[1], [0], [0], [1], [0, 0, 1, 1], [], []>} : vector<6x3xf32>, vector<3x8xf32>, vector<6x8xf32> -> vector<6x8xf32>
      %c0_28 = arith.constant 0 : index
      %c0_29 = arith.constant 0 : index
      %55 = vector.load %arg5[%c0_28, %c0_29] : memref<6x8xf32, #tpu.memory_space<vmem>>, vector<6x8xf32>
      tpu.vector_store %arg5[%c0_28, %c0_29], %54 {strides = array<i32>} : memref<6x8xf32, #tpu.memory_space<vmem>>, vector<6x8xf32>,
    } else {
    }
    %c0 = arith.constant 0 : index
    %c0_1 = arith.constant 0 : index
    %c0_2 = arith.constant 0 : index
    %3 = vector.load %arg2[%c0, %c0_1, %c0_2] : memref<1x6x3xf32, #tpu.memory_space<vmem>>, vector<1x6x3xf32>
    %4 = vector.shape_cast %3 : vector<1x6x3xf32> to vector<6x3xf32>
    %c0_3 = arith.constant 0 : index
    %c0_4 = arith.constant 0 : index
    %5 = vector.load %arg3[%c0_3, %c0_4] : memref<3x12xf32, #tpu.memory_space<vmem>>, vector<3x4xf32>
    %cst = arith.constant dense<0.000000e+00> : vector<6x4xf32>
    %6 = tpu.matmul %4, %5, %cst {dimension_numbers = #tpu.dot_dimension_numbers<[1], [0], [0], [1], [0, 0, 1, 1], [], []>} : vector<6x3xf32>, vector<3x4xf32>, vector<6x4xf32> -> vector<6x4xf32>
    %cst_5 = arith.constant 0.707106769 : f32
    %7 = vector.broadcast %cst_5 : f32 to vector<6x4xf32>
    %8 = arith.mulf %6, %7 : vector<6x4xf32>
    %9 = vector.extract_strided_slice %8 {offsets = [0, 0], sizes = [6, 2], strides = [1, 1]} : vector<6x4xf32> to vector<6x2xf32>
    %10 = vector.extract_strided_slice %8 {offsets = [0, 2], sizes = [6, 2], strides = [1, 1]} : vector<6x4xf32> to vector<6x2xf32>
    %11 = tpu.iota {dimensions = array<i32: 0>} : vector<6x6xi32>
    %12 = tpu.iota {dimensions = array<i32: 1>} : vector<6x6xi32>
    %13 = arith.cmpi sgt, %12, %11 : vector<6x6xi32>
    %c0_6 = arith.constant 0 : index
    %c0_7 = arith.constant 0 : index
    %14 = vector.load %arg5[%c0_6, %c0_7] : memref<6x8xf32, #tpu.memory_space<vmem>>, vector<6x8xf32>
    %15 = vector.extract_strided_slice %14 {offsets = [0, 0], sizes = [6, 2], strides = [1, 1]} : vector<6x8xf32> to vector<6x2xf32>
    %16 = vector.extract_strided_slice %14 {offsets = [0, 4], sizes = [6, 2], strides = [1, 1]} : vector<6x8xf32> to vector<6x2xf32>
    %cst_8 = arith.constant dense<0.000000e+00> : vector<6x6xf32>
    %17 = tpu.matmul %9, %15, %cst_8 {dimension_numbers = #tpu.dot_dimension_numbers<[1], [1], [0], [0], [0, 0, 1, 0], [], []>} : vector<6x2xf32>, vector<6x2xf32>, vector<6x6xf32> -> vector<6x6xf32>
    %cst_9 = arith.constant -1.000000e+30 : f32
    %18 = vector.broadcast %cst_9 : f32 to vector<6x6xf32>
    %19 = arith.select %13, %18, %17 : vector<6x6xi1>, vector<6x6xf32>
    %cst_10 = arith.constant dense<0xFF800000> : vector<6xf32>
    %20 = vector.multi_reduction <maximumf>, %19, %cst_10 [1] : vector<6x6xf32> to vector<6xf32>
    %21 = vector.shape_cast %20 : vector<6xf32> to vector<6x1xf32>
    %22 = vector.broadcast %21 : vector<6x1xf32> to vector<6x6xf32>
    %23 = arith.subf %19, %22 : vector<6x6xf32>
    %24 = math.exp %23 : vector<6x6xf32>
    %cst_11 = arith.constant dense<0.000000e+00> : vector<6xf32>
    %25 = vector.multi_reduction <add>, %24, %cst_11 [1] : vector<6x6xf32> to vector<6xf32>
    %26 = vector.shape_cast %25 : vector<6xf32> to vector<6x1xf32>
    %cst_12 = arith.constant dense<0.000000e+00> : vector<6x2xf32>
    %27 = tpu.matmul %24, %16, %cst_12 {dimension_numbers = #tpu.dot_dimension_numbers<[1], [0], [0], [1], [0, 0, 1, 1], [], []>} : vector<6x6xf32>, vector<6x2xf32>, vector<6x2xf32> -> vector<6x2xf32>
    %28 = vector.broadcast %26 : vector<6x1xf32> to vector<6x2xf32>
    %29 = arith.divf %27, %28 : vector<6x2xf32>
    %c0_13 = arith.constant 0 : index
    %c0_14 = arith.constant 0 : index
    %c0_15 = arith.constant 0 : index
    %30 = vector.load %arg4[%c0_13, %c0_14, %c0_15] : memref<1x6x4xf32, #tpu.memory_space<vmem>>, vector<1x6x2xf32>
    %31 = vector.shape_cast %30 : vector<1x6x2xf32> to vector<6x2xf32>
    %32 = vector.shape_cast %29 : vector<6x2xf32> to vector<1x6x2xf32>
    tpu.vector_store %arg4[%c0_13, %c0_14, %c0_15], %32 {strides = array<i32>} : memref<1x6x4xf32, #tpu.memory_space<vmem>>, vector<1x6x2xf32>,
    %33 = vector.extract_strided_slice %14 {offsets = [0, 2], sizes = [6, 2], strides = [1, 1]} : vector<6x8xf32> to vector<6x2xf32>
    %34 = vector.extract_strided_slice %14 {offsets = [0, 6], sizes = [6, 2], strides = [1, 1]} : vector<6x8xf32> to vector<6x2xf32>
    %cst_16 = arith.constant dense<0.000000e+00> : vector<6x6xf32>
    %35 = tpu.matmul %10, %33, %cst_16 {dimension_numbers = #tpu.dot_dimension_numbers<[1], [1], [0], [0], [0, 0, 1, 0], [], []>} : vector<6x2xf32>, vector<6x2xf32>, vector<6x6xf32> -> vector<6x6xf32>
    %cst_17 = arith.constant -1.000000e+30 : f32
    %36 = vector.broadcast %cst_17 : f32 to vector<6x6xf32>
    %37 = arith.select %13, %36, %35 : vector<6x6xi1>, vector<6x6xf32>
    %cst_18 = arith.constant dense<0xFF800000> : vector<6xf32>
    %38 = vector.multi_reduction <maximumf>, %37, %cst_18 [1] : vector<6x6xf32> to vector<6xf32>
    %39 = vector.shape_cast %38 : vector<6xf32> to vector<6x1xf32>
    %40 = vector.broadcast %39 : vector<6x1xf32> to vector<6x6xf32>
    %41 = arith.subf %37, %40 : vector<6x6xf32>
    %42 = math.exp %41 : vector<6x6xf32>
    %cst_19 = arith.constant dense<0.000000e+00> : vector<6xf32>
    %43 = vector.multi_reduction <add>, %42, %cst_19 [1] : vector<6x6xf32> to vector<6xf32>
    %44 = vector.shape_cast %43 : vector<6xf32> to vector<6x1xf32>
    %cst_20 = arith.constant dense<0.000000e+00> : vector<6x2xf32>
    %45 = tpu.matmul %42, %34, %cst_20 {dimension_numbers = #tpu.dot_dimension_numbers<[1], [0], [0], [1], [0, 0, 1, 1], [], []>} : vector<6x6xf32>, vector<6x2xf32>, vector<6x2xf32> -> vector<6x2xf32>
    %46 = vector.broadcast %44 : vector<6x1xf32> to vector<6x2xf32>
    %47 = arith.divf %45, %46 : vector<6x2xf32>
    %c0_21 = arith.constant 0 : index
    %c0_22 = arith.constant 0 : index
    %c2 = arith.constant 2 : index
    %48 = vector.load %arg4[%c0_21, %c0_22, %c2] : memref<1x6x4xf32, #tpu.memory_space<vmem>>, vector<1x6x2xf32>
    %49 = vector.shape_cast %48 : vector<1x6x2xf32> to vector<6x2xf32>
    %50 = vector.shape_cast %47 : vector<6x2xf32> to vector<1x6x2xf32>
    tpu.vector_store %arg4[%c0_21, %c0_22, %c2], %50 {strides = array<i32>} : memref<1x6x4xf32, #tpu.memory_space<vmem>>, vector<1x6x2xf32>,
    return
  }
  func.func @transform_0(%arg0: i32, %arg1: i32) -> (i32, i32, i32) {
    %c0_i32 = arith.constant 0 : i32
    %c0_i32_0 = arith.constant 0 : i32
    %c0_i32_1 = arith.constant 0 : i32
    return %arg0, %c0_i32, %c0_i32_0 : i32, i32, i32
  }
  func.func @transform_1(%arg0: i32, %arg1: i32) -> (i32, i32) {
    %c0_i32 = arith.constant 0 : i32
    %c0_i32_0 = arith.constant 0 : i32
    %c0_i32_1 = arith.constant 0 : i32
    return %c0_i32, %c0_i32_0 : i32, i32
  }
  func.func @transform_2(%arg0: i32, %arg1: i32) -> (i32, i32, i32) {
    %c0_i32 = arith.constant 0 : i32
    %c0_i32_0 = arith.constant 0 : i32
    return %arg0, %arg1, %c0_i32 : i32, i32, i32
  }
}

</mosaic_0001>

<bundles_post_ra>
// kernel: tpu_custom_call.1
= control target key start
LH: loop header
LB: loop body
LE: loop exit
PB: predicated region body
PF: predicated region fallthrough
CT: control target
= control target key end

     0   :  { %s895_s9 = smov 0   ;;  %s897_s10 = smov 0   ;;  %s967_s0 = inlined_call_operand.vmem [shape: f32[2,6,3], index: 0, kind: input, shape index: {}]   ;;  %s968_s1 = inlined_call_operand.vmem [shape: f32[3,12], index: 1, kind: input, shape index: {}]   ;;  %s969_s2 = inlined_call_operand.vmem [shape: f32[2,6,4], index: 2, kind: output, shape index: {}]  }
   0x1   :  { %s899_s11 = smov 0  }
   0x2 LB: > { %s24_s12 = sadd.s32 1, %s868_s10  ;;  %p753_p0 = scmp.ge.s32.totalorder %s872_s11, 1  ;;  %s872_s11 = sphi %s899_s11, %s12_s11   ;;  %s868_s10 = sphi %s897_s10, %s971_s10   ;;  %s864_s9 = sphi %s895_s9, %s970_s9  }
   0x3   : > { %p26_p1 = scmp.ge.s32.totalorder %s24_s12, 2  ;;  %p125_p2 = scmp.lt.s32.totalorder %s872_s11, 3 }
   0x5   : > { %s973_s12 = smov (%p26_p1, %s24_s12), 0  ;;  %p126_p3 = pnand %p753_p0, %p125_p2 }
   0x6   : > { %v164_v0 = vld [vmem:[%s968_s1] sm:$0x7] (!%p126_p3)  ;;  %s874_s15 = smov (!%p126_p3), 124   ;;  %v875_v1 = vmov (!%p126_p3), 0.0   ;;  %p148_p4 = scmp.lt.s32.totalorder (!%p126_p3), %s864_s9, 1  ;;  %vm172_vm0 = vcmask (!%p126_p3), 1042432   ;;  %v328_v14 = vlaneseq (!%p126_p3) }
   0x7   : > { %129 = sbr.rel (%p126_p3) target bundleno = 1162 (0x48a), region = 28  ;;  %166 = vrot.lane.b32.xlu0 (!%p126_p3), %v164_v0, %s874_s15  ;;  %782 = vmatprep.subr.mxu0 (!%p126_p3), %v875_v1  ;;  %v248_v2 = vld [vmem:[%s968_s1] sm:$0x7] (!%p126_p3)  ;;  %vm876_vm1 = vmmov (!%p126_p3), 0   ;;  %vm168_vm2 = vcmask (!%p126_p3), 23552   ;;  %s877_s22 = smov (!%p126_p3), 126  }
   0x8   : > { %784 = vmatprep.mubr.msk.f32.mxu0 (!%p126_p3), %vm876_vm1, %v875_v1  ;;  %787 = vmatprep.subr.mxu1 (!%p126_p3), %v875_v1  ;;  %vm245_vm3 = vcmask (!%p126_p3), 62464   ;;  %vm334_vm4 = vcmask (!%p126_p3), 15360   ;;  %v329_v15 = vshrl.u32 (!%p126_p3), %v328_v14, 7  ;;  %v331_v16 = vand.u32 (!%p126_p3), 127, %v328_v14  ;;  %s878_s23 = smov (!%p126_p3), 122   ;;  %s879_s27 = smov (!%p126_p3), 2  }
   0x9   : > { %788 = vmatpush3.msk.msra.mxu1 (!%p126_p3), %vm172_vm0, %v248_v2  ;;  %789 = vmatprep.mubr.msk.f32.mxu1 (!%p126_p3), %vm876_vm1, %v875_v1  ;;  %vm412_vm6 = vcmask (!%p126_p3), 46080   ;;  %vm428_vm7 = vcmask (!%p126_p3), 1045504   ;;  %vm424_vm8 = vcmask (!%p126_p3), 48128   ;;  %vm503_vm9 = vcmask (!%p126_p3), 13312  }
   0xa   : > { %797 = vmatprep.subr.mxu1 (!%p126_p3), %v875_v1  ;;  %vm332_vm5 = vcmp.gt.s32.totalorder (!%p126_p3), %v331_v16, %v329_v15  ;;  %vm676_vm10 = vcmask (!%p126_p3), 29712  }
   0xe   : > { %s975_s9 = smov (!%p148_p4, %s864_s9), 1 }
   0xf   : > { %s754_s18 = sshll.u32 %s975_s9, 3 }
  0x10   : > { %s151_s21 = scalar_lea.vmem %s967_s0, %s754_s18  ;;  %s158_s26 = scalar_lea.vmem %s969_s2, %s754_s18 }
  0x11   : > { %v247_v3 = vld [vmem:[%s151_s21] sm:$0x3f] }
  0x12   : > { %790 = vmatmul.mubr.msk.f32.vlgmr.msra.gmra.mrb[0].mxu1 %vm168_vm2, %v247_v3  ;;  %v163_v4 = vld [vmem:[%s151_s21] sm:$0x3f] }
  0x13   : > { %799 = vmatprep.mubr.msk.f32.mxu1 %vm876_vm1, %v875_v1 }
  0x79   : > { %v167_v5 = vpop.permute.xlu0 %166 }
  0x7a   : > { %783 = vmatpush3.msk.msra.mxu0 %vm172_vm0, %v167_v5 }
  0x7b   : > { %785 = vmatmul.mubr.msk.f32.vlgmr.msra.gmra.mrb[0].mxu0 %vm168_vm2, %v163_v4  ;;  %792 = vmatprep.subr.mxu0 %v875_v1 }
  0x7c   : > { %794 = vmatprep.mubr.msk.f32.mxu0 %vm876_vm1, %v875_v1 }
  0xe5   : > { %v323_v6 = vpop.f32.mrb[0].mxu1 }
  0xe6   : > { %v327_v7 = vmul.f32 0.70710677, %v323_v6  ;;  %v791_v8 = vpop.f32.mrb[1].mxu1 }
  0xe8   : > { %505 = vrot.lane.b32.xlu1 %v327_v7, %s877_s22 }
 0x14e   : > { %v241_v9 = vpop.f32.mrb[0].mxu0 }
 0x14f   : > { %246 = vst.msk [vmem:[#allocation2] sm:$0x3f] %vm245_vm3, %v241_v9  ;;  %v786_v10 = vpop.f32.mrb[1].mxu0 }
 0x156   : > { %v333_v11 = vld [vmem:[#allocation2] sm:$0x3f] }
 0x157   : > { %507 = vrot.lane.b32.xlu0 %v333_v11, %s877_s22  ;;  %793 = vmatpush3.xpose.msk.msra.mxu0 %vm334_vm4, %v333_v11 }
 0x158   : > { %802 = vmatprep.subr.mxu0 %v875_v1 }
 0x15a   : > { %795 = vmatmul.mubr.msk.f32.vlgmr.msra.gmra.mrb[2].mxu0 %vm334_vm4, %v327_v7  ;;  %v506_v13 = vpop.permute.xlu1 %505 }
 0x15b   : > { %804 = vmatprep.mubr.msk.f32.mxu0 %vm876_vm1, %v875_v1 }
 0x1c9   : > { %v508_v12 = vpop.permute.xlu0 %507 }
 0x1ca   : > { %803 = vmatpush3.xpose.msk.msra.mxu0 %vm334_vm4, %v508_v12 }
 0x1cd   : > { %805 = vmatmul.mubr.msk.f32.vlgmr.msra.gmra.mrb[4].mxu0 %vm334_vm4, %v506_v13 }
 0x22d   : > { %v407_v17 = vpop.f32.mrb[2].mxu0 }
 0x22e   : > { %v411_v18 = vsel %vm332_vm5, -1e+30, %v407_v17  ;;  %v796_v19 = vpop.f32.mrb[3].mxu0 }
 0x22f   : > { %v413_v20 = vsel %vm412_vm6, %v411_v18, -inf }
 0x230   : > { %414 = vmax.xlane.f32.xlu1 %v413_v20 }
 0x241   : > { %593 = vrot.lane.b32.xlu1 %v333_v11, %s878_s23 }
 0x2a0   : > { %v579_v21 = vpop.f32.mrb[4].mxu0 }
 0x2a1   : > { %v583_v22 = vsel %vm332_vm5, -1e+30, %v579_v21  ;;  %v806_v23 = vpop.f32.mrb[5].mxu0 }
 0x2a2   : > { %v584_v24 = vsel %vm412_vm6, %v583_v22, -inf }
 0x2a3   : > { %585 = vmax.xlane.f32.xlu0 %v584_v24 }
 0x2b9   : > { %422 = vrot.lane.b32.xlu0 %v333_v11, %s874_s15 }
 0x2bd   : > { %v415_v25 = vpop.xlane.xlu1 %414 }
 0x2be   : > { %v416_v26 = vsub.f32 %v411_v18, %v415_v25 }
 0x2c0   : > { %v417_v27 = vmul.f32 1.442695, %v416_v26 }
 0x2c1   : > { %v594_v34 = vpop.permute.xlu1 %593 }
 0x2c2   : > { %842 = vpow2.f32 %v417_v27 }
 0x2cc   : > { %v843_v28 = vpop.eup %842 }
 0x2cd   : > { %v419_v29 = vsel %vm412_vm6, %v843_v28, 0.0 }
 0x2d8   : > { %420 = vadd.xlane.f32.xlu0 %v419_v29 }
 0x330   : > { %v586_v30 = vpop.xlane.xlu0 %585 }
 0x331   : > { %v587_v31 = vsub.f32 %v583_v22, %v586_v30 }
 0x333   : > { %v588_v32 = vmul.f32 1.442695, %v587_v31 }
 0x334   : > { %v423_v33 = vpop.permute.xlu0 %422 }
 0x335   : > { %844 = vpow2.f32 %v588_v32  ;;  %798 = vmatpush3.msk.msra.mxu1 %vm428_vm7, %v423_v33 }
 0x336   : > { %800 = vmatmul.mubr.msk.f32.vlgmr.msra.gmra.mrb[2].mxu1 %vm424_vm8, %v843_v28  ;;  %807 = vmatprep.subr.mxu1 %v875_v1 }
 0x337   : > { %808 = vmatpush3.msk.msra.mxu1 %vm428_vm7, %v594_v34  ;;  %809 = vmatprep.mubr.msk.f32.mxu1 %vm876_vm1, %v875_v1 }
 0x33f   : > { %v845_v35 = vpop.eup %844 }
 0x340   : > { %810 = vmatmul.mubr.msk.f32.vlgmr.msra.gmra.mrb[4].mxu1 %vm424_vm8, %v845_v35  ;;  %v590_v36 = vsel %vm412_vm6, %v845_v35, 0.0 }
 0x341   : > { %591 = vadd.xlane.f32.xlu1 %v590_v36 }
 0x365   : > { %v421_v37 = vpop.xlane.xlu0 %420 }
 0x366   : > { %846 = vrcp.f32 %v421_v37 }
 0x370   : > { %v847_v39 = vpop.eup %846 }
 0x3ce   : > { %v592_v38 = vpop.xlane.xlu1 %591 }
 0x3cf   : > { %848 = vrcp.f32 %v592_v38 }
 0x3d9   : > { %v849_v43 = vpop.eup %848 }
 0x409   : > { %v497_v40 = vpop.f32.mrb[2].mxu1 }
 0x40a   : > { %v502_v41 = vmul.f32 %v847_v39, %v497_v40  ;;  %v801_v42 = vpop.f32.mrb[3].mxu1 }
 0x40c   : > { %504 = vst.msk [vmem:[%s158_s26] sm:$0x3f] %vm503_vm9, %v502_v41 }
 0x413   : > { %v666_v44 = vpop.f32.mrb[4].mxu1 }
 0x414   : > { %v671_v45 = vmul.f32 %v849_v43, %v666_v44  ;;  %v811_v46 = vpop.f32.mrb[5].mxu1 }
 0x416   : > { %673 = vrot.lane.b32.xlu0 %v671_v45, %s879_s27 }
 0x488   : > { %v674_v47 = vpop.permute.xlu0 %673 }
 0x489   : > { %677 = vst.msk [vmem:[%s158_s26] sm:$0x3f] %vm676_vm10, %v674_v47 }
 0x48a PF: > { %s12_s11 = sadd.s32 1, %s872_s11   ;;  %s970_s9 = smov %s868_s10 }
 0x48b   : > { %p9_p5 = scmp.ge.s32.totalorder %s12_s11, 4   ;;  %s971_s10 = smov %s973_s12 }
 0x48d   :  { %11 = sbr.rel (!%p9_p5) target bundleno = 2 (0x2), region = 62 }

</bundles_post_ra>
